<compile_context>
chip_gen: v7x
topology: tpu7x:2x2x1
jax: 0.10.0
libtpu: 0.0.40
codegen_flags: <defaults>
</compile_context>

<pallas_src>
import functools

import jax
import jax.numpy as jnp
from jax import lax
from jax.experimental import pallas as pl
from jax.experimental.pallas import tpu as pltpu


def _dora_gemm_kernel(*refs, has_bias):
    """Produces one (tm, tn) output tile; grid axis 2 is the K reduction."""
    if has_bias:
        x_ref, w_ref, mns_ref, bias_ref, o_ref, acc_ref = refs
    else:
        x_ref, w_ref, mns_ref, o_ref, acc_ref = refs
        bias_ref = None

    k = pl.program_id(2)

    @pl.when(k == 0)
    def _():
        acc_ref[...] = jnp.zeros_like(acc_ref)

    # x tile (tm, tk) contracted with W_eff tile (tn, tk) along axis 1,
    # i.e. x @ W_eff_tile.T, with f32 accumulation on the MXU.
    acc_ref[...] += lax.dot_general(
        x_ref[...], w_ref[...], (((1,), (1,)), ((), ())),
        preferred_element_type=jnp.float32)

    @pl.when(k == pl.num_programs(2) - 1)
    def _():
        out = mns_ref[...] * acc_ref[...]
        if has_bias:
            out = out + bias_ref[...]
        o_ref[...] = out.astype(o_ref.dtype)


def _pick_tile(dim, want, align):
    """Largest tile <= want that is either the full dim or an `align`-multiple
    divisor of dim.  Returns an align-multiple (caller pads) only as fallback."""
    want = min(want, dim)
    if want == dim:
        return dim                        # full-extent tile is always legal
    want = max(align, (want // align) * align)
    t = want
    while t >= align:
        if dim % t == 0:
            return t
        t -= align
    return want                           # no aligned divisor: caller pads dim


def dora_linear(x, weight, lora_right, lora_left, magnitude, bias, scaling,
                *, tm=512, tn=512, tk=1024, mxu_dtype=jnp.bfloat16):
    """DoRA linear forward.

    x: (M, in);  weight: (out, in) [nn.Linear layout];  lora_right: (in, r);
    lora_left: (r, out);  magnitude: (out,);  bias: (out,) or None.
    mxu_dtype: operand dtype for the GEMM (None -> keep x.dtype); accumulation
    and epilogue are always f32.
    """
    M, IN = x.shape
    OUT, IN2 = weight.shape
    assert IN == IN2, "x / weight feature dims disagree"

    f32 = jnp.float32
    # ---- Weight-only DoRA precompute, hoisted out of the kernel ------------
    lora_w = lora_left.T.astype(f32) @ lora_right.T.astype(f32)        # (OUT, IN)
    w_eff = weight.astype(f32) + scaling * lora_w                      # (OUT, IN)
    row_norm = jnp.sqrt(jnp.sum(w_eff * w_eff, axis=1))                # (OUT,)
    mns = (magnitude.astype(f32) / row_norm).reshape(1, OUT)           # (1, OUT)
    has_bias = bias is not None
    bias_eff = mns * bias.astype(f32).reshape(1, OUT) if has_bias else None

    # ---- Operand dtype cast in the wrapper (halves DMA bytes for bf16) -----
    op_dtype = jnp.dtype(x.dtype) if mxu_dtype is None else jnp.dtype(mxu_dtype)
    x_op = x.astype(op_dtype)
    w_op = w_eff.astype(op_dtype)

    # ---- Tiling -------------------------------------------------------------
    tm = _pick_tile(M, tm, 8)      # sublane-aligned
    tn = _pick_tile(OUT, tn, 128)  # lane-aligned (output lane dim)
    tk = _pick_tile(IN, tk, 128)   # lane-aligned (contraction lane dim)
    m_p = pl.cdiv(M, tm) * tm
    n_p = pl.cdiv(OUT, tn) * tn
    k_p = pl.cdiv(IN, tk) * tk

    if (m_p, k_p) != (M, IN):
        # Fallback only (extra HBM copy of x); _pick_tile prefers divisor tiles
        # precisely so this path is rarely taken.  Zero K-padding is exact.
        x_op = jnp.pad(x_op, ((0, m_p - M), (0, k_p - IN)))
    if (n_p, k_p) != (OUT, IN):
        w_op = jnp.pad(w_op, ((0, n_p - OUT), (0, k_p - IN)))   # fresh array: cheap
    if n_p != OUT:
        mns = jnp.pad(mns, ((0, 0), (0, n_p - OUT)))
        if has_bias:
            bias_eff = jnp.pad(bias_eff, ((0, 0), (0, n_p - OUT)))

    grid = (m_p // tm, n_p // tn, k_p // tk)

    # ---- VMEM budget (double-buffered in/out tiles + f32 accumulator) ------
    op_bytes = jnp.dtype(op_dtype).itemsize
    out_bytes = jnp.dtype(x.dtype).itemsize
    vmem_est = (2 * tm * tk * op_bytes + 2 * tn * tk * op_bytes
                + 2 * tm * tn * out_bytes + tm * tn * 4 + 4 * 2 * tn * 4)
    vmem_limit = int(min(64 * 1024 * 1024, max(32 * 1024 * 1024, 1.5 * vmem_est)))

    in_arrays = [x_op, w_op, mns]
    in_specs = [
        pl.BlockSpec((tm, tk), lambda i, j, k: (i, k)),   # x tile
        pl.BlockSpec((tn, tk), lambda i, j, k: (j, k)),   # W_eff tile (x @ W.T)
        pl.BlockSpec((1, tn), lambda i, j, k: (0, j)),    # mns row
    ]
    if has_bias:
        in_arrays.append(bias_eff)
        in_specs.append(pl.BlockSpec((1, tn), lambda i, j, k: (0, j)))  # mns*bias

    flops = 2 * m_p * n_p * k_p
    bytes_accessed = int(m_p * k_p * op_bytes + n_p * k_p * op_bytes
                         + (2 if has_bias else 1) * n_p * 4
                         + m_p * n_p * out_bytes)

    out = pl.pallas_call(
        functools.partial(_dora_gemm_kernel, has_bias=has_bias),
        out_shape=jax.ShapeDtypeStruct((m_p, n_p), x.dtype),
        grid=grid,
        in_specs=in_specs,
        out_specs=pl.BlockSpec((tm, tn), lambda i, j, k: (i, j)),
        scratch_shapes=[pltpu.VMEM((tm, tn), jnp.float32)],
        compiler_params=pltpu.CompilerParams(
            dimension_semantics=("parallel", "parallel", "arbitrary"),
            vmem_limit_bytes=vmem_limit),
        cost_estimate=pl.CostEstimate(
            flops=flops, transcendentals=0, bytes_accessed=bytes_accessed),
    )(*in_arrays)

    if (m_p, n_p) != (M, OUT):
        out = out[:M, :OUT]
    return out


def dora_reference(x, weight, lora_right, lora_left, magnitude, bias, scaling):
    """Pure-JAX transcription of DoRALinear.forward (fuse_lora=False)."""
    base = x @ weight.T + (0.0 if bias is None else bias[None, :])
    lora_w = lora_left.T @ lora_right.T
    norm = jnp.linalg.norm(weight + scaling * lora_w, axis=1)
    mns = (magnitude / norm)[None, :]
    return base + (mns - 1.0) * base + mns * (x @ lora_right @ lora_left) * scaling


if __name__ == "__main__":
    # Small deterministic setup consistent with DoRALinear.__init__.
    batch, seq = 2, 8
    in_features, out_features = 256, 256
    lora_dim = 8
    lora_scaling = 1.0
    scaling = lora_scaling / lora_dim          # module: lora_scaling / lora_dim

    key = jax.random.PRNGKey(0)
    k_x, k_w, k_r, k_l, k_m, k_b = jax.random.split(key, 6)

    M = batch * seq                            # row-major flatten of (B, S, in)
    x = jax.random.normal(k_x, (M, in_features), dtype=jnp.float32)
    weight = jax.random.normal(
        k_w, (out_features, in_features), dtype=jnp.float32) * 0.05
    # (Synthetic) non-zero LoRA params so the DoRA path is actually exercised;
    # the PyTorch init zeroes lora_left, collapsing the LoRA branch to 0.
    lora_right = jax.random.uniform(
        k_r, (in_features, lora_dim), minval=-0.3, maxval=0.3, dtype=jnp.float32)
    lora_left = jax.random.uniform(
        k_l, (lora_dim, out_features), minval=-0.3, maxval=0.3, dtype=jnp.float32)
    magnitude = jax.random.uniform(
        k_m, (out_features,), minval=0.5, maxval=1.5, dtype=jnp.float32)
    bias = jax.random.normal(k_b, (out_features,), dtype=jnp.float32) * 0.1

    ref = dora_reference(x, weight, lora_right, lora_left, magnitude, bias, scaling)
    ref_nb = dora_reference(x, weight, lora_right, lora_left, magnitude, None, scaling)

    # 1) f32 operands, auto-clamped tiles -> tight tolerance.
    out_f32 = jax.block_until_ready(dora_linear(
        x, weight, lora_right, lora_left, magnitude, bias, scaling,
        mxu_dtype=None))
    assert out_f32.shape == (M, out_features)
    assert jnp.allclose(out_f32, ref, rtol=1e-4, atol=1e-4), "f32 path mismatch"

    # 2) bf16 operands (default), small explicit tiles so the 2x2x2 grid and
    #    the K-accumulator init/finalize logic are exercised.
    out_bf16 = jax.block_until_ready(dora_linear(
        x, weight, lora_right, lora_left, magnitude, bias, scaling,
        tm=8, tn=128, tk=128))
    assert jnp.allclose(out_bf16, ref, rtol=5e-2, atol=1e-1), "bf16 path mismatch"

    # 3) bias=None path (kernel variant without the bias stream).
    out_nb = jax.block_until_ready(dora_linear(
        x, weight, lora_right, lora_left, magnitude, None, scaling,
        mxu_dtype=None))
    assert jnp.allclose(out_nb, ref_nb, rtol=1e-4, atol=1e-4), "no-bias path mismatch"

    print("KERNEL_OK")
</pallas_src>

<mosaic_0001>
module attributes {stable_mosaic.version = 11 : i64} {
  func.func @_dora_gemm_kernel(%arg0: i32, %arg1: i32, %arg2: i32, %arg3: memref<16x256xf32, #tpu.memory_space<vmem>>, %arg4: memref<256x256xf32, #tpu.memory_space<vmem>>, %arg5: memref<1x256xf32, #tpu.memory_space<vmem>>, %arg6: memref<1x256xf32, #tpu.memory_space<vmem>>, %arg7: memref<16x256xf32, #tpu.memory_space<vmem>>, %arg8: memref<16x256xf32, #tpu.memory_space<vmem>>) attributes {dimension_semantics = [#tpu.dimension_semantics<parallel>, #tpu.dimension_semantics<parallel>, #tpu.dimension_semantics<arbitrary>], iteration_bounds = array<i64: 1, 1, 1>, scalar_prefetch = 0 : i64, scratch_operands = 1 : i64, tpu.core_type = #tpu.core_type<tc>, window_params = [{transform_indices = @transform_0, window_bounds = array<i64: 16, 256>}, {transform_indices = @transform_1, window_bounds = array<i64: 256, 256>}, {transform_indices = @transform_2, window_bounds = array<i64: 1, 256>}, {transform_indices = @transform_3, window_bounds = array<i64: 1, 256>}, {transform_indices = @transform_4, window_bounds = array<i64: 16, 256>}]} {
    %c0_i32 = arith.constant 0 : i32
    %0 = arith.cmpi eq, %arg2, %c0_i32 : i32
    %1 = arith.extui %0 : i1 to i32
    %c0_i32_0 = arith.constant 0 : i32
    %2 = arith.cmpi ne, %1, %c0_i32_0 : i32
    scf.if %2 {
      %cst_10 = arith.constant 0.000000e+00 : f32
      %12 = vector.broadcast %cst_10 : f32 to vector<16x256xf32>
      %c0_11 = arith.constant 0 : index
      %c0_12 = arith.constant 0 : index
      %13 = vector.load %arg8[%c0_11, %c0_12] : memref<16x256xf32, #tpu.memory_space<vmem>>, vector<16x256xf32>
      tpu.vector_store %arg8[%c0_11, %c0_12], %12 {strides = array<i32>} : memref<16x256xf32, #tpu.memory_space<vmem>>, vector<16x256xf32>,
    } else {
    }
    %c0 = arith.constant 0 : index
    %c0_1 = arith.constant 0 : index
    %3 = vector.load %arg8[%c0, %c0_1] : memref<16x256xf32, #tpu.memory_space<vmem>>, vector<16x256xf32>
    %c0_2 = arith.constant 0 : index
    %c0_3 = arith.constant 0 : index
    %4 = vector.load %arg3[%c0_2, %c0_3] : memref<16x256xf32, #tpu.memory_space<vmem>>, vector<16x256xf32>
    %c0_4 = arith.constant 0 : index
    %c0_5 = arith.constant 0 : index
    %5 = vector.load %arg4[%c0_4, %c0_5] : memref<256x256xf32, #tpu.memory_space<vmem>>, vector<256x256xf32>
    %cst = arith.constant dense<0.000000e+00> : vector<16x256xf32>
    %6 = tpu.matmul %4, %5, %cst {dimension_numbers = #tpu.dot_dimension_numbers<[1], [1], [0], [0], [0, 0, 1, 0], [], []>} : vector<16x256xf32>, vector<256x256xf32>, vector<16x256xf32> -> vector<16x256xf32>
    %7 = arith.addf %3, %6 : vector<16x256xf32>
    %c0_6 = arith.constant 0 : index
    %c0_7 = arith.constant 0 : index
    %8 = vector.load %arg8[%c0_6, %c0_7] : memref<16x256xf32, #tpu.memory_space<vmem>>, vector<16x256xf32>
    tpu.vector_store %arg8[%c0_6, %c0_7], %7 {strides = array<i32>} : memref<16x256xf32, #tpu.memory_space<vmem>>, vector<16x256xf32>,
    %c0_i32_8 = arith.constant 0 : i32
    %9 = arith.cmpi eq, %arg2, %c0_i32_8 : i32
    %10 = arith.extui %9 : i1 to i32
    %c0_i32_9 = arith.constant 0 : i32
    %11 = arith.cmpi ne, %10, %c0_i32_9 : i32
    scf.if %11 {
      %c0_10 = arith.constant 0 : index
      %c0_11 = arith.constant 0 : index
      %12 = vector.load %arg5[%c0_10, %c0_11] : memref<1x256xf32, #tpu.memory_space<vmem>>, vector<1x256xf32>
      %c0_12 = arith.constant 0 : index
      %c0_13 = arith.constant 0 : index
      %13 = vector.load %arg8[%c0_12, %c0_13] : memref<16x256xf32, #tpu.memory_space<vmem>>, vector<16x256xf32>
      %14 = vector.broadcast %12 : vector<1x256xf32> to vector<16x256xf32>
      %15 = arith.mulf %14, %13 : vector<16x256xf32>
      %c0_14 = arith.constant 0 : index
      %c0_15 = arith.constant 0 : index
      %16 = vector.load %arg6[%c0_14, %c0_15] : memref<1x256xf32, #tpu.memory_space<vmem>>, vector<1x256xf32>
      %17 = vector.broadcast %16 : vector<1x256xf32> to vector<16x256xf32>
      %18 = arith.addf %15, %17 : vector<16x256xf32>
      %c0_16 = arith.constant 0 : index
      %c0_17 = arith.constant 0 : index
      %19 = vector.load %arg7[%c0_16, %c0_17] : memref<16x256xf32, #tpu.memory_space<vmem>>, vector<16x256xf32>
      tpu.vector_store %arg7[%c0_16, %c0_17], %18 {strides = array<i32>} : memref<16x256xf32, #tpu.memory_space<vmem>>, vector<16x256xf32>,
    } else {
    }
    return
  }
  func.func @transform_0(%arg0: i32, %arg1: i32, %arg2: i32) -> (i32, i32) {
    %c0_i32 = arith.constant 0 : i32
    return %arg0, %arg2 : i32, i32
  }
  func.func @transform_1(%arg0: i32, %arg1: i32, %arg2: i32) -> (i32, i32) {
    %c0_i32 = arith.constant 0 : i32
    return %arg1, %arg2 : i32, i32
  }
  func.func @transform_2(%arg0: i32, %arg1: i32, %arg2: i32) -> (i32, i32) {
    %c0_i32 = arith.constant 0 : i32
    %c0_i32_0 = arith.constant 0 : i32
    return %c0_i32, %arg1 : i32, i32
  }
  func.func @transform_3(%arg0: i32, %arg1: i32, %arg2: i32) -> (i32, i32) {
    %c0_i32 = arith.constant 0 : i32
    %c0_i32_0 = arith.constant 0 : i32
    return %c0_i32, %arg1 : i32, i32
  }
  func.func @transform_4(%arg0: i32, %arg1: i32, %arg2: i32) -> (i32, i32) {
    %c0_i32 = arith.constant 0 : i32
    return %arg0, %arg1 : i32, i32
  }
}

</mosaic_0001>

<bundles_post_ra>
// kernel: tpu_custom_call.1
= control target key start
LH: loop header
LB: loop body
LE: loop exit
PB: predicated region body
PF: predicated region fallthrough
CT: control target
= control target key end

     0   :  { %9 = vsyncpa [#allocation4], 0  ;;  %s526_s0 = inlined_call_operand.hbm [shape: f32[16,256], index: 0, kind: input, shape index: {}]   ;;  %s527_s1 = inlined_call_operand.hbm [shape: f32[256,256], index: 1, kind: input, shape index: {}]   ;;  %s528_s2 = inlined_call_operand.vmem [shape: f32[1,256], index: 2, kind: input, shape index: {}]   ;;  %s529_s3 = inlined_call_operand.vmem [shape: f32[1,256], index: 3, kind: input, shape index: {}]   ;;  %s530_s4 = inlined_call_operand.hbm [shape: f32[16,256], index: 4, kind: output, shape index: {}]  }
   0x1   :  { %10 = vsyncpa [#allocation7], 0 }
   0x2   :  { %11 = vsyncpa [#allocation5], 0  ;;  %s445_s15 = smov [#allocation3]   ;;  %s373_s19 = scalar_lea.hbm %s526_s0, 512 }
   0x3   :  { %s17_s16 = sshll.u32 %s445_s15, 4  ;;  %p374_p0 = scmp.ne.s32.totalorder %s526_s0, %s373_s19  ;;  %s18_s16 = int_to_ptr.vmem [resolvable:$true] %s17_s16 }
   0x4   :  { %p377_p1 = scmp.lt.u32.totalorder %s373_s19, %s526_s0 }
   0x6   :  { %p379_p2 = pnand %p377_p1, %p374_p0 }
   0x8   :  { %382 = shalt.err (!%p379_p2)
}
   0x9   :  { %s383_s24 = scalar_lea.vmem %s18_s16, 512  ;;  %p388_p4 = scmp.lt.s32.totalorder %s18_s16, %s18_s16 }
   0xa   :  { %p384_p3 = scmp.ne.s32.totalorder %s18_s16, %s383_s24  ;;  %p389_p5 = scmp.lt.s32.totalorder %s383_s24, %s383_s24 }
   0xc   :  { %p390_p6 = por %p389_p5, %p388_p4 }
   0xe   :  { %p391_p7 = pnand %p390_p6, %p384_p3 }
  0x10   :  { %394 = shalt.err (!%p391_p7)
}
  0x11   :  { %s446_s25 = smov 256   ;;  %s447_s26 = smov 16  }
  0x12   :  { %23 = dma.hbm_to_vmem [thread:$0]  %s526_s0, 512, %s18_s16, [#allocation4], %s446_s25, %s446_s25, %s447_s26  }
  0x13   :  { %s448_s29 = smov [#allocation6]   ;;  %s395_s7 = scalar_lea.hbm %s527_s1, 8192 }
  0x14   :  { %s29_s30 = sshll.u32 %s448_s29, 4  ;;  %p396_p8 = scmp.ne.s32.totalorder %s527_s1, %s395_s7  ;;  %s30_s30 = int_to_ptr.vmem [resolvable:$true] %s29_s30 }
  0x15   :  { %p399_p9 = scmp.lt.u32.totalorder %s395_s7, %s527_s1 }
  0x17   :  { %p401_p10 = pnand %p399_p9, %p396_p8 }
  0x19   :  { %404 = shalt.err (!%p401_p10)
}
  0x1a   :  { %s405_s12 = scalar_lea.vmem %s30_s30, 8192  ;;  %p410_p12 = scmp.lt.s32.totalorder %s30_s30, %s30_s30 }
  0x1b   :  { %p406_p11 = scmp.ne.s32.totalorder %s30_s30, %s405_s12  ;;  %p411_p13 = scmp.lt.s32.totalorder %s405_s12, %s405_s12 }
  0x1d   :  { %p412_p0 = por %p411_p13, %p410_p12 }
  0x1f   :  { %p413_p1 = pnand %p412_p0, %p406_p11 }
  0x21   :  { %416 = shalt.err (!%p413_p1)
}
  0x22   :  { %35 = dma.hbm_to_vmem [thread:$0]  %s527_s1, 8192, %s30_s30, [#allocation7], %s446_s25, %s446_s25, %s447_s26  }
  0x23   :  { %439 = dma.done.wait [#allocation4], 512  }
  0x24   :  { %440 = vsyncadd [#allocation4], 4294966784 }
  0x25   :  { %441 = dma.done.wait [#allocation7], 8192  }
  0x26   :  { %442 = vsyncadd [#allocation7], 4294959104  ;;  %v63_v0 = vld [vmem:[#allocation6 + $0x8] sm:$0xff]  ;;  %v65_v1 = vld [vmem:[#allocation6 + $0x18] sm:$0xff]  ;;  %s449_s17 = smov [#allocation8]  }
  0x27   :  { %v62_v2 = vld [vmem:[#allocation6] sm:$0xff]  ;;  %v272_v3 = vpack.c.bf16 %v65_v1, %v63_v0  ;;  %v64_v4 = vld [vmem:[#allocation6 + $0x10] sm:$0xff]  ;;  %v67_v5 = vld [vmem:[#allocation6 + $0x28] sm:$0xff]  ;;  %s259_s18 = sshll.u32 %s449_s17, 4  ;;  %s260_s18 = int_to_ptr.vmem [resolvable:$true] %s259_s18 }
  0x28   :  { %v69_v6 = vld [vmem:[#allocation6 + $0x38] sm:$0xff]  ;;  %v274_v7 = vpack.c.bf16 %v64_v4, %v62_v2  ;;  %v66_v9 = vld [vmem:[#allocation6 + $0x20] sm:$0xff]  ;;  %v68_v10 = vld [vmem:[#allocation6 + $0x30] sm:$0xff]  ;;  %p422_p3 = scmp.lt.s32.totalorder %s260_s18, %s260_s18 }
  0x29   :  { %v276_v8 = vpack.c.bf16 %v69_v6, %v67_v5  ;;  %273 = vmatprep.subr.bf16.mxu0 %v272_v3  ;;  %336 = vmatprep.subr.bf16.mxu1 %v272_v3  ;;  %v71_v11 = vld [vmem:[#allocation6 + $0x48] sm:$0xff]  ;;  %v73_v12 = vld [vmem:[#allocation6 + $0x58] sm:$0xff]  ;;  %v278_v13 = vpack.c.bf16 %v68_v10, %v66_v9  ;;  %v70_v15 = vld [vmem:[#allocation6 + $0x40] sm:$0xff] }
  0x2a   :  { %275 = vmatpush1.bf16.xpose.msra.mxu0 %v274_v7  ;;  %352 = vmatpush1.bf16.xpose.msra.mxu1 %v274_v7  ;;  %v280_v14 = vpack.c.bf16 %v73_v12, %v71_v11  ;;  %v72_v16 = vld [vmem:[#allocation6 + $0x50] sm:$0xff]  ;;  %v75_v17 = vld [vmem:[#allocation6 + $0x68] sm:$0xff]  ;;  %v77_v18 = vld [vmem:[#allocation6 + $0x78] sm:$0xff] }
  0x2b   :  { %277 = vmatprep.subr.bf16.mxu0 %v276_v8  ;;  %337 = vmatprep.subr.bf16.mxu1 %v276_v8  ;;  %v282_v19 = vpack.c.bf16 %v72_v16, %v70_v15  ;;  %v284_v20 = vpack.c.bf16 %v77_v18, %v75_v17  ;;  %v74_v21 = vld [vmem:[#allocation6 + $0x60] sm:$0xff]  ;;  %v76_v22 = vld [vmem:[#allocation6 + $0x70] sm:$0xff]  ;;  %v59_v23 = vld [vmem:[#allocation3 + $0x8] sm:$0xff] }
  0x2c   :  { %v61_v24 = vld [vmem:[#allocation3 + $0x18] sm:$0xff]  ;;  %v79_v25 = vld [vmem:[#allocation6 + $0x88] sm:$0xff]  ;;  %190 = vmatprep.mubr.f32.mxu0 %v59_v23  ;;  %v286_v27 = vpack.c.bf16 %v76_v22, %v74_v21  ;;  %v78_v29 = vld [vmem:[#allocation6 + $0x80] sm:$0xff] }
  0x2d   :  { %v81_v26 = vld [vmem:[#allocation6 + $0x98] sm:$0xff]  ;;  %196 = vmatprep.mubr.f32.mxu1 %v61_v24  ;;  %v80_v30 = vld [vmem:[#allocation6 + $0x90] sm:$0xff]  ;;  %v83_v31 = vld [vmem:[#allocation6 + $0xa8] sm:$0xff] }
  0x2e   :  { %v288_v28 = vpack.c.bf16 %v81_v26, %v79_v25  ;;  %v85_v32 = vld [vmem:[#allocation6 + $0xb8] sm:$0xff]  ;;  %v290_v33 = vpack.c.bf16 %v80_v30, %v78_v29  ;;  %v82_v35 = vld [vmem:[#allocation6 + $0xa0] sm:$0xff]  ;;  %v84_v36 = vld [vmem:[#allocation6 + $0xb0] sm:$0xff] }
  0x2f   :  { %v292_v34 = vpack.c.bf16 %v85_v32, %v83_v31  ;;  %v87_v37 = vld [vmem:[#allocation6 + $0xc8] sm:$0xff]  ;;  %v89_v38 = vld [vmem:[#allocation6 + $0xd8] sm:$0xff]  ;;  %v294_v39 = vpack.c.bf16 %v84_v36, %v82_v35  ;;  %v86_v41 = vld [vmem:[#allocation6 + $0xc0] sm:$0xff]  ;;  %v220_v36 = vlaneseq }
  0x30   :  { %v296_v40 = vpack.c.bf16 %v89_v38, %v87_v37  ;;  %v88_v42 = vld [vmem:[#allocation6 + $0xd0] sm:$0xff]  ;;  %v91_v43 = vld [vmem:[#allocation6 + $0xe8] sm:$0xff]  ;;  %v93_v44 = vld [vmem:[#allocation6 + $0xf8] sm:$0xff] }
  0x31   :  { %v298_v45 = vpack.c.bf16 %v88_v42, %v86_v41  ;;  %v300_v46 = vpack.c.bf16 %v93_v44, %v91_v43  ;;  %v90_v47 = vld [vmem:[#allocation6 + $0xe0] sm:$0xff]  ;;  %v92_v48 = vld [vmem:[#allocation6 + $0xf0] sm:$0xff]  ;;  %v95_v49 = vld [vmem:[#allocation6 + $0x108] sm:$0xff]  ;;  %v221_v37 = vshrl.u32 %v220_v36, 7 }
  0x32   :  { %279 = vmatpush1.bf16.xpose.msra.mxu0 %v278_v13  ;;  %353 = vmatpush1.bf16.xpose.msra.mxu1 %v278_v13  ;;  %v97_v50 = vld [vmem:[#allocation6 + $0x118] sm:$0xff]  ;;  %v302_v51 = vpack.c.bf16 %v92_v48, %v90_v47  ;;  %v94_v53 = vld [vmem:[#allocation6 + $0x100] sm:$0xff]  ;;  %v96_v54 = vld [vmem:[#allocation6 + $0x110] sm:$0xff] }
  0x33   :  { %281 = vmatprep.subr.bf16.mxu0 %v280_v14  ;;  %338 = vmatprep.subr.bf16.mxu1 %v280_v14  ;;  %v304_v52 = vpack.c.bf16 %v97_v50, %v95_v49  ;;  %v99_v55 = vld [vmem:[#allocation6 + $0x128] sm:$0xff]  ;;  %v101_v56 = vld [vmem:[#allocation6 + $0x138] sm:$0xff]  ;;  %v306_v57 = vpack.c.bf16 %v96_v54, %v94_v53  ;;  %v98_v59 = vld [vmem:[#allocation6 + $0x120] sm:$0xff]  ;;  %v222_v38 = vsub.s32 0, %v221_v37 }
  0x34   :  { %v308_v58 = vpack.c.bf16 %v101_v56, %v99_v55  ;;  %v100_v60 = vld [vmem:[#allocation6 + $0x130] sm:$0xff]  ;;  %v103_v61 = vld [vmem:[#allocation6 + $0x148] sm:$0xff]  ;;  %v105_v62 = vld [vmem:[#allocation6 + $0x158] sm:$0xff] }
  0x35   :  { %v310_v63 = vpack.c.bf16 %v100_v60, %v98_v59  ;;  %v312_v0 = vpack.c.bf16 %v105_v62, %v103_v61  ;;  %v102_v1 = vld [vmem:[#allocation6 + $0x140] sm:$0xff]  ;;  %v104_v2 = vld [vmem:[#allocation6 + $0x150] sm:$0xff]  ;;  %v107_v3 = vld [vmem:[#allocation6 + $0x168] sm:$0xff] }
  0x36   :  { %v109_v4 = vld [vmem:[#allocation6 + $0x178] sm:$0xff]  ;;  %v314_v5 = vpack.c.bf16 %v104_v2, %v102_v1  ;;  %v106_v7 = vld [vmem:[#allocation6 + $0x160] sm:$0xff]  ;;  %v108_v8 = vld [vmem:[#allocation6 + $0x170] sm:$0xff] }
  0x37   :  { %v316_v6 = vpack.c.bf16 %v109_v4, %v107_v3  ;;  %v111_v9 = vld [vmem:[#allocation6 + $0x188] sm:$0xff]  ;;  %v113_v10 = vld [vmem:[#allocation6 + $0x198] sm:$0xff]  ;;  %v318_v11 = vpack.c.bf16 %v108_v8, %v106_v7  ;;  %v110_v13 = vld [vmem:[#allocation6 + $0x180] sm:$0xff] }
  0x38   :  { %v320_v12 = vpack.c.bf16 %v113_v10, %v111_v9  ;;  %v112_v14 = vld [vmem:[#allocation6 + $0x190] sm:$0xff]  ;;  %v115_v15 = vld [vmem:[#allocation6 + $0x1a8] sm:$0xff]  ;;  %v117_v16 = vld [vmem:[#allocation6 + $0x1b8] sm:$0xff] }
  0x39   :  { %v322_v17 = vpack.c.bf16 %v112_v14, %v110_v13  ;;  %v324_v18 = vpack.c.bf16 %v117_v16, %v115_v15  ;;  %v119_v21 = vld [vmem:[#allocation6 + $0x1c8] sm:$0xff]  ;;  %v121_v22 = vld [vmem:[#allocation6 + $0x1d8] sm:$0xff]  ;;  %v118_v25 = vld [vmem:[#allocation6 + $0x1c0] sm:$0xff] }
  0x3a   :  { %283 = vmatpush1.bf16.xpose.msra.mxu0 %v282_v19  ;;  %354 = vmatpush1.bf16.xpose.msra.mxu1 %v282_v19  ;;  %v114_v19 = vld [vmem:[#allocation6 + $0x1a0] sm:$0xff]  ;;  %v328_v24 = vpack.c.bf16 %v121_v22, %v119_v21  ;;  %v120_v26 = vld [vmem:[#allocation6 + $0x1d0] sm:$0xff] }
  0x3b   :  { %285 = vmatprep.subr.bf16.mxu0 %v284_v20  ;;  %339 = vmatprep.subr.bf16.mxu1 %v284_v20  ;;  %v116_v20 = vld [vmem:[#allocation6 + $0x1b0] sm:$0xff]  ;;  %v330_v29 = vpack.c.bf16 %v120_v26, %v118_v25  ;;  %v122_v31 = vld [vmem:[#allocation6 + $0x1e0] sm:$0xff] }
  0x3c   :  { %v326_v23 = vpack.c.bf16 %v116_v20, %v114_v19  ;;  %v124_v32 = vld [vmem:[#allocation6 + $0x1f0] sm:$0xff]  ;;  %v234_v41 = vld [vmem:[%s529_s3] sm:$0x3] }
  0x3d   :  { %v60_v35 = vld [vmem:[#allocation3 + $0x10] sm:$0xff]  ;;  %v239_v44 = vrot.slane %v234_v41, %v222_v38 }
  0x42   :  { %287 = vmatpush1.bf16.xpose.msra.mxu0 %v286_v27  ;;  %355 = vmatpush1.bf16.xpose.msra.mxu1 %v286_v27  ;;  %v123_v27 = vld [vmem:[#allocation6 + $0x1e8] sm:$0xff] }
  0x43   :  { %289 = vmatprep.subr.bf16.mxu0 %v288_v28  ;;  %340 = vmatprep.subr.bf16.mxu1 %v288_v28  ;;  %v125_v28 = vld [vmem:[#allocation6 + $0x1f8] sm:$0xff] }
  0x44   :  { %v332_v30 = vpack.c.bf16 %v125_v28, %v123_v27 }
  0x4a   :  { %291 = vmatpush1.bf16.xpose.msra.mxu0 %v290_v33  ;;  %356 = vmatpush1.bf16.xpose.msra.mxu1 %v290_v33  ;;  %v334_v33 = vpack.c.bf16 %v124_v32, %v122_v31 }
  0x4b   :  { %293 = vmatprep.subr.bf16.mxu0 %v292_v34  ;;  %341 = vmatprep.subr.bf16.mxu1 %v292_v34  ;;  %v58_v34 = vld [vmem:[#allocation3] sm:$0xff] }
  0x52   :  { %295 = vmatpush1.bf16.xpose.msra.mxu0 %v294_v39  ;;  %357 = vmatpush1.bf16.xpose.msra.mxu1 %v294_v39  ;;  %v214_v39 = vld [vmem:[%s528_s2] sm:$0x3]  ;;  %s417_s2 = scalar_lea.vmem %s260_s18, 512 }
  0x53   :  { %297 = vmatprep.subr.bf16.mxu0 %v296_v40  ;;  %342 = vmatprep.subr.bf16.mxu1 %v296_v40  ;;  %v226_v40 = vsub.s32 1, %v221_v37  ;;  %v223_v42 = vrot.slane %v214_v39, %v222_v38  ;;  %p418_p2 = scmp.ne.s32.totalorder %s260_s18, %s417_s2  ;;  %p423_p4 = scmp.lt.s32.totalorder %s417_s2, %s417_s2 }
  0x55   :  { %v227_v43 = vrot.slane %v214_v39, %v226_v40  ;;  %v243_v47 = vrot.slane %v234_v41, %v226_v40  ;;  %p424_p5 = por %p423_p4, %p422_p3 }
  0x57   :  { %p425_p6 = pnand %p424_p5, %p418_p2 }
  0x5a   :  { %299 = vmatpush1.bf16.xpose.msra.mxu0 %v298_v45  ;;  %358 = vmatpush1.bf16.xpose.msra.mxu1 %v298_v45 }
  0x5b   :  { %301 = vmatprep.subr.bf16.mxu0 %v300_v46  ;;  %343 = vmatprep.subr.bf16.mxu1 %v300_v46 }
  0x62   :  { %303 = vmatpush1.bf16.xpose.msra.mxu0 %v302_v51  ;;  %359 = vmatpush1.bf16.xpose.msra.mxu1 %v302_v51 }
  0x63   :  { %305 = vmatprep.subr.bf16.mxu0 %v304_v52  ;;  %344 = vmatprep.subr.bf16.mxu1 %v304_v52 }
  0x6a   :  { %307 = vmatpush1.bf16.xpose.msra.mxu0 %v306_v57  ;;  %360 = vmatpush1.bf16.xpose.msra.mxu1 %v306_v57 }
  0x6b   :  { %309 = vmatprep.subr.bf16.mxu0 %v308_v58  ;;  %345 = vmatprep.subr.bf16.mxu1 %v308_v58 }
  0x72   :  { %311 = vmatpush1.bf16.xpose.msra.mxu0 %v310_v63  ;;  %361 = vmatpush1.bf16.xpose.msra.mxu1 %v310_v63 }
  0x73   :  { %313 = vmatprep.subr.bf16.mxu0 %v312_v0  ;;  %346 = vmatprep.subr.bf16.mxu1 %v312_v0 }
  0x7a   :  { %315 = vmatpush1.bf16.xpose.msra.mxu0 %v314_v5  ;;  %362 = vmatpush1.bf16.xpose.msra.mxu1 %v314_v5 }
  0x7b   :  { %317 = vmatprep.subr.bf16.mxu0 %v316_v6  ;;  %347 = vmatprep.subr.bf16.mxu1 %v316_v6 }
  0x82   :  { %319 = vmatpush1.bf16.xpose.msra.mxu0 %v318_v11  ;;  %363 = vmatpush1.bf16.xpose.msra.mxu1 %v318_v11 }
  0x83   :  { %321 = vmatprep.subr.bf16.mxu0 %v320_v12  ;;  %348 = vmatprep.subr.bf16.mxu1 %v320_v12 }
  0x8a   :  { %323 = vmatpush1.bf16.xpose.msra.mxu0 %v322_v17  ;;  %364 = vmatpush1.bf16.xpose.msra.mxu1 %v322_v17 }
  0x8b   :  { %325 = vmatprep.subr.bf16.mxu0 %v324_v18  ;;  %349 = vmatprep.subr.bf16.mxu1 %v324_v18 }
  0x92   :  { %327 = vmatpush1.bf16.xpose.msra.mxu0 %v326_v23  ;;  %365 = vmatpush1.bf16.xpose.msra.mxu1 %v326_v23 }
  0x93   :  { %329 = vmatprep.subr.bf16.mxu0 %v328_v24  ;;  %350 = vmatprep.subr.bf16.mxu1 %v328_v24 }
  0x9a   :  { %331 = vmatpush1.bf16.xpose.msra.mxu0 %v330_v29  ;;  %366 = vmatpush1.bf16.xpose.msra.mxu1 %v330_v29 }
  0x9b   :  { %333 = vmatprep.subr.bf16.mxu0 %v332_v30  ;;  %351 = vmatprep.subr.bf16.mxu1 %v332_v30 }
  0xa2   :  { %335 = vmatpush1.bf16.xpose.msra.mxu0 %v334_v33  ;;  %367 = vmatpush1.bf16.xpose.msra.mxu1 %v334_v33 }
  0xa9   :  { %191 = vmatmul.mubr.f32.vlgmr.msra.gmra.mrb[0].mxu0 %v58_v34  ;;  %197 = vmatmul.mubr.f32.vlgmr.msra.gmra.mrb[0].mxu1 %v60_v35 }
 0x17c   :  { %v192_v45 = vpop.f32.mrb[0].mxu0  ;;  %v198_v46 = vpop.f32.mrb[0].mxu1 }
 0x17d   :  { %v230_v48 = vmul.f32 %v223_v42, %v192_v45  ;;  %v232_v49 = vmul.f32 %v223_v42, %v198_v46  ;;  %v194_v50 = vpop.f32.mrb[1].mxu0  ;;  %v200_v51 = vpop.f32.mrb[1].mxu1 }
 0x17e   :  { %v231_v52 = vmul.f32 %v227_v43, %v194_v50  ;;  %v233_v53 = vmul.f32 %v227_v43, %v200_v51 }
 0x17f   :  { %v246_v54 = vadd.f32 %v239_v44, %v230_v48  ;;  %v248_v55 = vadd.f32 %v239_v44, %v232_v49 }
 0x180   :  { %v247_v56 = vadd.f32 %v243_v47, %v231_v52  ;;  %v249_v57 = vadd.f32 %v243_v47, %v233_v53 }
 0x181   :  { %250 = vst [vmem:[#allocation8] sm:$0xff] %v246_v54  ;;  %252 = vst [vmem:[#allocation8 + $0x10] sm:$0xff] %v248_v55 }
 0x182   :  { %251 = vst [vmem:[#allocation8 + $0x8] sm:$0xff] %v247_v56  ;;  %253 = vst [vmem:[#allocation8 + $0x18] sm:$0xff] %v249_v57 }
 0x183   :  { %428 = shalt.err (!%p425_p6)
}
 0x184   :  { %s429_s20 = scalar_lea.hbm %s530_s4, 512 }
 0x185   :  { %p430_p7 = scmp.ne.s32.totalorder %s530_s4, %s429_s20  ;;  %p433_p8 = scmp.lt.u32.totalorder %s429_s20, %s530_s4 }
 0x187   :  { %p435_p9 = pnand %p433_p8, %p430_p7 }
 0x189   :  { %438 = shalt.err (!%p435_p9)
}
 0x18a   :  { %265 = dma.vmem_to_hbm [thread:$0]  %s260_s18, 512, %s530_s4, [#allocation5], %s446_s25, %s446_s25, %s447_s26  }
 0x18b   :  { %443 = dma.done.wait [#allocation5], 512  }
 0x18c   :  { %444 = vsyncadd [#allocation5], 4294966784 }
 0x18d   :  { %269 = vsyncpa [#allocation4], 1 }
 0x18e   :  { %270 = vsyncpa [#allocation7], 1 }
 0x18f   :  { %271 = vsyncpa [#allocation5], 1 }

</bundles_post_ra>
